<compile_context>
chip_gen: v6e
topology: v6e:2x2x1
jax: 0.10.0
libtpu: 0.0.40
codegen_flags: <defaults>
</compile_context>

<pallas_src>
import functools

import jax
import jax.numpy as jnp
from jax.experimental import pallas as pl
from jax.experimental.pallas import tpu as pltpu

VOCAB = 400003                 # <UNK>=0, <PAD>=1, <EOS>=2, then words (as in PyTorch)
LANE = 128
DEFAULT_BLOCK_TOKENS = 256     # rows gathered per grid step (multiple of 8)
N_INFLIGHT = 8                 # outstanding row DMAs per grid step
MAX_TOKENS_PER_CALL = 1 << 15  # keep the scalar-prefetched id array well inside SMEM
MIN_PALLAS_TOKENS = 64         # below this, pallas_call launch overhead dominates


def _round_up(n, m):
    return ((n + m - 1) // m) * m


def _gather_block_kernel(block_tokens, n_inflight, ids_ref, emb_hbm, out_ref, sems):
    """Gather `block_tokens` table rows (HBM) directly into the (T, dpad) output block."""
    blk = pl.program_id(0)
    base = pl.multiple_of(blk * block_tokens, block_tokens)

    def row_copy(t):
        # t is a Python int in the prologue/epilogue and a traced scalar in the main loop.
        row = ids_ref[base + t]
        return pltpu.make_async_copy(
            emb_hbm.at[row], out_ref.at[t], sems.at[t % n_inflight])

    n_pro = min(n_inflight, block_tokens)

    # Prime the pipeline: n_pro row DMAs in flight.
    for t in range(n_pro):
        row_copy(t).start()

    # Steady state: retire row t, immediately launch row t + n_pro on the same semaphore.
    @pl.loop(0, block_tokens - n_pro)
    def _(t):
        row_copy(t).wait()
        row_copy(t + n_pro).start()

    # Drain the tail.
    for t in range(block_tokens - n_pro, block_tokens):
        row_copy(t).wait()


def _gather_call(ids, emb_padded, block_tokens, n_inflight):
    n_pad = ids.shape[0]
    n_blocks = n_pad // block_tokens
    dpad = emb_padded.shape[1]
    kernel = functools.partial(_gather_block_kernel, block_tokens, n_inflight)
    return pl.pallas_call(
        kernel,
        out_shape=jax.ShapeDtypeStruct((n_pad, dpad), emb_padded.dtype),
        grid_spec=pltpu.PrefetchScalarGridSpec(
            num_scalar_prefetch=1,                          # ids land in SMEM
            grid=(n_blocks,),
            in_specs=[pl.BlockSpec(memory_space=pl.ANY)],   # table stays in HBM
            out_specs=pl.BlockSpec((block_tokens, dpad), lambda i, ids: (i, 0)),
            scratch_shapes=[pltpu.SemaphoreType.DMA((n_inflight,))],
        ),
        compiler_params=pltpu.CompilerParams(
            dimension_semantics=("parallel",),              # rows independent: megacore-friendly
        ),
    )(ids, emb_padded)


@functools.partial(jax.jit, static_argnames=("dim", "block_tokens", "n_inflight"))
def glove_embedding_forward(x, emb_padded, *, dim,
                            block_tokens=DEFAULT_BLOCK_TOKENS,
                            n_inflight=N_INFLIGHT):
    """x: integer indices of any shape; emb_padded: (VOCAB, dpad) f32 table."""
    orig_shape = x.shape
    ids = jnp.clip(x.reshape(-1).astype(jnp.int32), 0, VOCAB - 1)  # bounds-safe gather
    n_tok = ids.shape[0]

    if n_tok < MIN_PALLAS_TOKENS:
        # Tiny batches: XLA's native gather beats kernel launch + grid overhead.
        return jnp.take(emb_padded, ids, axis=0)[:, :dim].reshape(*orig_shape, dim)

    bt = min(block_tokens, _round_up(n_tok, 8))
    n_pad = _round_up(n_tok, bt)
    if n_pad > n_tok:
        ids = jnp.pad(ids, (0, n_pad - n_tok))  # pad with row 0 (<UNK>); sliced off below

    # Chunk the token stream so the scalar-prefetched id array stays small in SMEM.
    call_cap = max(bt, (MAX_TOKENS_PER_CALL // bt) * bt)
    chunks = []
    for start in range(0, n_pad, call_cap):
        stop = min(start + call_cap, n_pad)
        chunks.append(_gather_call(ids[start:stop], emb_padded, bt, n_inflight))
    out_padded = chunks[0] if len(chunks) == 1 else jnp.concatenate(chunks, axis=0)

    # TODO(synk): for dim < 128 this slice is one extra memory pass; downstream consumers
    # could read the padded (N, 128) slab directly (first `dim` lanes) and skip it.
    return out_padded[:n_tok, :dim].reshape(*orig_shape, dim)


def make_glove_table(dim, key):
    """Deterministic synthetic stand-in for the GloVe table (no file I/O).

    Matches the PyTorch init structure: rows 0 (<UNK>) and 1 (<PAD>) are zero,
    row 2 (<EOS>) and word rows carry (synthetic) values.
    """
    # TODO(synk): real GloVe vectors come from glove.6B.<dim>d.txt; synthetic rows here.
    emb = jax.random.normal(key, (VOCAB, dim), dtype=jnp.float32)
    emb = emb.at[0].set(0.0).at[1].set(0.0)
    # Pad feature dim to 128 lanes: aligned 512 B row DMAs and a lane-dense output block.
    dpad = _round_up(dim, LANE)
    emb_padded = jnp.zeros((VOCAB, dpad), dtype=jnp.float32).at[:, :dim].set(emb)
    return emb, emb_padded


if __name__ == "__main__":
    dim = 50  # GloveEmbedding(dim=50)
    key = jax.random.PRNGKey(0)
    k_emb, k_ids = jax.random.split(key)

    emb, emb_padded = make_glove_table(dim, k_emb)

    # (batch=4, seq=128) -> 512 tokens -> two 256-token grid blocks through the Pallas path.
    x = jax.random.randint(k_ids, (4, 128), minval=0, maxval=VOCAB, dtype=jnp.int32)
    out = jax.block_until_ready(glove_embedding_forward(x, emb_padded, dim=dim))
    ref = jnp.take(emb, x, axis=0)
    assert out.shape == (4, 128, dim), out.shape
    assert out.dtype == jnp.float32
    assert jnp.allclose(out, ref), "mismatch vs reference gather (pallas path)"

    # (batch=2, seq=8) -> 16 tokens -> jnp.take fast path for tiny batches.
    x_small = jax.random.randint(jax.random.PRNGKey(1), (2, 8),
                                 minval=0, maxval=VOCAB, dtype=jnp.int32)
    out_small = jax.block_until_ready(
        glove_embedding_forward(x_small, emb_padded, dim=dim))
    assert out_small.shape == (2, 8, dim), out_small.shape
    assert jnp.allclose(out_small, jnp.take(emb, x_small, axis=0)), \
        "mismatch vs reference gather (small-batch path)"

    print("KERNEL_OK")
</pallas_src>

<mosaic_0001>
module attributes {stable_mosaic.version = 11 : i64} {
  func.func @_gather_block_kernel(%arg0: i32, %arg1: memref<512xi32, #tpu.memory_space<smem>>, %arg2: memref<400003x128xf32, #tpu.memory_space<any>>, %arg3: memref<256x128xf32, #tpu.memory_space<vmem>>, %arg4: memref<8x!tpu.dma_semaphore, #tpu.memory_space<semaphore_mem>>) attributes {dimension_semantics = [#tpu.dimension_semantics<parallel>], iteration_bounds = array<i64: 2>, scalar_prefetch = 1 : i64, scratch_operands = 1 : i64, tpu.core_type = #tpu.core_type<tc>, window_params = [{}, {transform_indices = @transform_1, window_bounds = array<i64: 256, 128>}]} {
    %c256_i32 = arith.constant 256 : i32
    %0 = arith.muli %arg0, %c256_i32 : i32
    %1 = tpu.assume_multiple %0, 256 : i32
    %c0_i32 = arith.constant 0 : i32
    %2 = arith.addi %1, %c0_i32 : i32
    %3 = arith.index_cast %2 : i32 to index
    %4 = memref.load %arg1[%3] : memref<512xi32, #tpu.memory_space<smem>>
    %c0_i32_0 = arith.constant 0 : i32
    %c0_i32_1 = arith.constant 0 : i32
    %c0_i32_2 = arith.constant 0 : i32
    %5 = tpu.memref_slice %arg2[%4, %c0_i32_2] : memref<400003x128xf32, #tpu.memory_space<any>> -> memref<1x128xf32, #tpu.memory_space<any>>
    %6 = tpu.memref_squeeze %5 : memref<1x128xf32, #tpu.memory_space<any>> -> memref<128xf32, #tpu.memory_space<any>>
    %c0_i32_3 = arith.constant 0 : i32
    %7 = tpu.memref_slice %arg3[%c0_i32_0, %c0_i32_3] : memref<256x128xf32, #tpu.memory_space<vmem>> -> memref<1x128xf32, #tpu.memory_space<vmem>>
    %8 = tpu.memref_squeeze %7 : memref<1x128xf32, #tpu.memory_space<vmem>> -> memref<128xf32, #tpu.memory_space<vmem>>
    %9 = tpu.memref_slice %arg4[%c0_i32_1] : memref<8x!tpu.dma_semaphore, #tpu.memory_space<semaphore_mem>> -> memref<1x!tpu.dma_semaphore, #tpu.memory_space<semaphore_mem>>
    %10 = tpu.memref_squeeze %9 : memref<1x!tpu.dma_semaphore, #tpu.memory_space<semaphore_mem>> -> memref<!tpu.dma_semaphore, #tpu.memory_space<semaphore_mem>>
    tpu.enqueue_dma source(%6 : memref<128xf32, #tpu.memory_space<any>>) target(%8 : memref<128xf32, #tpu.memory_space<vmem>>) target_semaphore(%10 : memref<!tpu.dma_semaphore, #tpu.memory_space<semaphore_mem>>)
    %c1_i32 = arith.constant 1 : i32
    %11 = arith.addi %1, %c1_i32 : i32
    %12 = arith.index_cast %11 : i32 to index
    %13 = memref.load %arg1[%12] : memref<512xi32, #tpu.memory_space<smem>>
    %c1_i32_4 = arith.constant 1 : i32
    %c1_i32_5 = arith.constant 1 : i32
    %c0_i32_6 = arith.constant 0 : i32
    %14 = tpu.memref_slice %arg2[%13, %c0_i32_6] : memref<400003x128xf32, #tpu.memory_space<any>> -> memref<1x128xf32, #tpu.memory_space<any>>
    %15 = tpu.memref_squeeze %14 : memref<1x128xf32, #tpu.memory_space<any>> -> memref<128xf32, #tpu.memory_space<any>>
    %c0_i32_7 = arith.constant 0 : i32
    %16 = tpu.memref_slice %arg3[%c1_i32_4, %c0_i32_7] : memref<256x128xf32, #tpu.memory_space<vmem>> -> memref<1x128xf32, #tpu.memory_space<vmem>>
    %17 = tpu.memref_squeeze %16 : memref<1x128xf32, #tpu.memory_space<vmem>> -> memref<128xf32, #tpu.memory_space<vmem>>
    %18 = tpu.memref_slice %arg4[%c1_i32_5] : memref<8x!tpu.dma_semaphore, #tpu.memory_space<semaphore_mem>> -> memref<1x!tpu.dma_semaphore, #tpu.memory_space<semaphore_mem>>
    %19 = tpu.memref_squeeze %18 : memref<1x!tpu.dma_semaphore, #tpu.memory_space<semaphore_mem>> -> memref<!tpu.dma_semaphore, #tpu.memory_space<semaphore_mem>>
    tpu.enqueue_dma source(%15 : memref<128xf32, #tpu.memory_space<any>>) target(%17 : memref<128xf32, #tpu.memory_space<vmem>>) target_semaphore(%19 : memref<!tpu.dma_semaphore, #tpu.memory_space<semaphore_mem>>)
    %c2_i32 = arith.constant 2 : i32
    %20 = arith.addi %1, %c2_i32 : i32
    %21 = arith.index_cast %20 : i32 to index
    %22 = memref.load %arg1[%21] : memref<512xi32, #tpu.memory_space<smem>>
    %c2_i32_8 = arith.constant 2 : i32
    %c2_i32_9 = arith.constant 2 : i32
    %c0_i32_10 = arith.constant 0 : i32
    %23 = tpu.memref_slice %arg2[%22, %c0_i32_10] : memref<400003x128xf32, #tpu.memory_space<any>> -> memref<1x128xf32, #tpu.memory_space<any>>
    %24 = tpu.memref_squeeze %23 : memref<1x128xf32, #tpu.memory_space<any>> -> memref<128xf32, #tpu.memory_space<any>>
    %c0_i32_11 = arith.constant 0 : i32
    %25 = tpu.memref_slice %arg3[%c2_i32_8, %c0_i32_11] : memref<256x128xf32, #tpu.memory_space<vmem>> -> memref<1x128xf32, #tpu.memory_space<vmem>>
    %26 = tpu.memref_squeeze %25 : memref<1x128xf32, #tpu.memory_space<vmem>> -> memref<128xf32, #tpu.memory_space<vmem>>
    %27 = tpu.memref_slice %arg4[%c2_i32_9] : memref<8x!tpu.dma_semaphore, #tpu.memory_space<semaphore_mem>> -> memref<1x!tpu.dma_semaphore, #tpu.memory_space<semaphore_mem>>
    %28 = tpu.memref_squeeze %27 : memref<1x!tpu.dma_semaphore, #tpu.memory_space<semaphore_mem>> -> memref<!tpu.dma_semaphore, #tpu.memory_space<semaphore_mem>>
    tpu.enqueue_dma source(%24 : memref<128xf32, #tpu.memory_space<any>>) target(%26 : memref<128xf32, #tpu.memory_space<vmem>>) target_semaphore(%28 : memref<!tpu.dma_semaphore, #tpu.memory_space<semaphore_mem>>)
    %c3_i32 = arith.constant 3 : i32
    %29 = arith.addi %1, %c3_i32 : i32
    %30 = arith.index_cast %29 : i32 to index
    %31 = memref.load %arg1[%30] : memref<512xi32, #tpu.memory_space<smem>>
    %c3_i32_12 = arith.constant 3 : i32
    %c3_i32_13 = arith.constant 3 : i32
    %c0_i32_14 = arith.constant 0 : i32
    %32 = tpu.memref_slice %arg2[%31, %c0_i32_14] : memref<400003x128xf32, #tpu.memory_space<any>> -> memref<1x128xf32, #tpu.memory_space<any>>
    %33 = tpu.memref_squeeze %32 : memref<1x128xf32, #tpu.memory_space<any>> -> memref<128xf32, #tpu.memory_space<any>>
    %c0_i32_15 = arith.constant 0 : i32
    %34 = tpu.memref_slice %arg3[%c3_i32_12, %c0_i32_15] : memref<256x128xf32, #tpu.memory_space<vmem>> -> memref<1x128xf32, #tpu.memory_space<vmem>>
    %35 = tpu.memref_squeeze %34 : memref<1x128xf32, #tpu.memory_space<vmem>> -> memref<128xf32, #tpu.memory_space<vmem>>
    %36 = tpu.memref_slice %arg4[%c3_i32_13] : memref<8x!tpu.dma_semaphore, #tpu.memory_space<semaphore_mem>> -> memref<1x!tpu.dma_semaphore, #tpu.memory_space<semaphore_mem>>
    %37 = tpu.memref_squeeze %36 : memref<1x!tpu.dma_semaphore, #tpu.memory_space<semaphore_mem>> -> memref<!tpu.dma_semaphore, #tpu.memory_space<semaphore_mem>>
    tpu.enqueue_dma source(%33 : memref<128xf32, #tpu.memory_space<any>>) target(%35 : memref<128xf32, #tpu.memory_space<vmem>>) target_semaphore(%37 : memref<!tpu.dma_semaphore, #tpu.memory_space<semaphore_mem>>)
    %c4_i32 = arith.constant 4 : i32
    %38 = arith.addi %1, %c4_i32 : i32
    %39 = arith.index_cast %38 : i32 to index
    %40 = memref.load %arg1[%39] : memref<512xi32, #tpu.memory_space<smem>>
    %c4_i32_16 = arith.constant 4 : i32
    %c4_i32_17 = arith.constant 4 : i32
    %c0_i32_18 = arith.constant 0 : i32
    %41 = tpu.memref_slice %arg2[%40, %c0_i32_18] : memref<400003x128xf32, #tpu.memory_space<any>> -> memref<1x128xf32, #tpu.memory_space<any>>
    %42 = tpu.memref_squeeze %41 : memref<1x128xf32, #tpu.memory_space<any>> -> memref<128xf32, #tpu.memory_space<any>>
    %c0_i32_19 = arith.constant 0 : i32
    %43 = tpu.memref_slice %arg3[%c4_i32_16, %c0_i32_19] : memref<256x128xf32, #tpu.memory_space<vmem>> -> memref<1x128xf32, #tpu.memory_space<vmem>>
    %44 = tpu.memref_squeeze %43 : memref<1x128xf32, #tpu.memory_space<vmem>> -> memref<128xf32, #tpu.memory_space<vmem>>
    %45 = tpu.memref_slice %arg4[%c4_i32_17] : memref<8x!tpu.dma_semaphore, #tpu.memory_space<semaphore_mem>> -> memref<1x!tpu.dma_semaphore, #tpu.memory_space<semaphore_mem>>
    %46 = tpu.memref_squeeze %45 : memref<1x!tpu.dma_semaphore, #tpu.memory_space<semaphore_mem>> -> memref<!tpu.dma_semaphore, #tpu.memory_space<semaphore_mem>>
    tpu.enqueue_dma source(%42 : memref<128xf32, #tpu.memory_space<any>>) target(%44 : memref<128xf32, #tpu.memory_space<vmem>>) target_semaphore(%46 : memref<!tpu.dma_semaphore, #tpu.memory_space<semaphore_mem>>)
    %c5_i32 = arith.constant 5 : i32
    %47 = arith.addi %1, %c5_i32 : i32
    %48 = arith.index_cast %47 : i32 to index
    %49 = memref.load %arg1[%48] : memref<512xi32, #tpu.memory_space<smem>>
    %c5_i32_20 = arith.constant 5 : i32
    %c5_i32_21 = arith.constant 5 : i32
    %c0_i32_22 = arith.constant 0 : i32
    %50 = tpu.memref_slice %arg2[%49, %c0_i32_22] : memref<400003x128xf32, #tpu.memory_space<any>> -> memref<1x128xf32, #tpu.memory_space<any>>
    %51 = tpu.memref_squeeze %50 : memref<1x128xf32, #tpu.memory_space<any>> -> memref<128xf32, #tpu.memory_space<any>>
    %c0_i32_23 = arith.constant 0 : i32
    %52 = tpu.memref_slice %arg3[%c5_i32_20, %c0_i32_23] : memref<256x128xf32, #tpu.memory_space<vmem>> -> memref<1x128xf32, #tpu.memory_space<vmem>>
    %53 = tpu.memref_squeeze %52 : memref<1x128xf32, #tpu.memory_space<vmem>> -> memref<128xf32, #tpu.memory_space<vmem>>
    %54 = tpu.memref_slice %arg4[%c5_i32_21] : memref<8x!tpu.dma_semaphore, #tpu.memory_space<semaphore_mem>> -> memref<1x!tpu.dma_semaphore, #tpu.memory_space<semaphore_mem>>
    %55 = tpu.memref_squeeze %54 : memref<1x!tpu.dma_semaphore, #tpu.memory_space<semaphore_mem>> -> memref<!tpu.dma_semaphore, #tpu.memory_space<semaphore_mem>>
    tpu.enqueue_dma source(%51 : memref<128xf32, #tpu.memory_space<any>>) target(%53 : memref<128xf32, #tpu.memory_space<vmem>>) target_semaphore(%55 : memref<!tpu.dma_semaphore, #tpu.memory_space<semaphore_mem>>)
    %c6_i32 = arith.constant 6 : i32
    %56 = arith.addi %1, %c6_i32 : i32
    %57 = arith.index_cast %56 : i32 to index
    %58 = memref.load %arg1[%57] : memref<512xi32, #tpu.memory_space<smem>>
    %c6_i32_24 = arith.constant 6 : i32
    %c6_i32_25 = arith.constant 6 : i32
    %c0_i32_26 = arith.constant 0 : i32
    %59 = tpu.memref_slice %arg2[%58, %c0_i32_26] : memref<400003x128xf32, #tpu.memory_space<any>> -> memref<1x128xf32, #tpu.memory_space<any>>
    %60 = tpu.memref_squeeze %59 : memref<1x128xf32, #tpu.memory_space<any>> -> memref<128xf32, #tpu.memory_space<any>>
    %c0_i32_27 = arith.constant 0 : i32
    %61 = tpu.memref_slice %arg3[%c6_i32_24, %c0_i32_27] : memref<256x128xf32, #tpu.memory_space<vmem>> -> memref<1x128xf32, #tpu.memory_space<vmem>>
    %62 = tpu.memref_squeeze %61 : memref<1x128xf32, #tpu.memory_space<vmem>> -> memref<128xf32, #tpu.memory_space<vmem>>
    %63 = tpu.memref_slice %arg4[%c6_i32_25] : memref<8x!tpu.dma_semaphore, #tpu.memory_space<semaphore_mem>> -> memref<1x!tpu.dma_semaphore, #tpu.memory_space<semaphore_mem>>
    %64 = tpu.memref_squeeze %63 : memref<1x!tpu.dma_semaphore, #tpu.memory_space<semaphore_mem>> -> memref<!tpu.dma_semaphore, #tpu.memory_space<semaphore_mem>>
    tpu.enqueue_dma source(%60 : memref<128xf32, #tpu.memory_space<any>>) target(%62 : memref<128xf32, #tpu.memory_space<vmem>>) target_semaphore(%64 : memref<!tpu.dma_semaphore, #tpu.memory_space<semaphore_mem>>)
    %c7_i32 = arith.constant 7 : i32
    %65 = arith.addi %1, %c7_i32 : i32
    %66 = arith.index_cast %65 : i32 to index
    %67 = memref.load %arg1[%66] : memref<512xi32, #tpu.memory_space<smem>>
    %c7_i32_28 = arith.constant 7 : i32
    %c7_i32_29 = arith.constant 7 : i32
    %c0_i32_30 = arith.constant 0 : i32
    %68 = tpu.memref_slice %arg2[%67, %c0_i32_30] : memref<400003x128xf32, #tpu.memory_space<any>> -> memref<1x128xf32, #tpu.memory_space<any>>
    %69 = tpu.memref_squeeze %68 : memref<1x128xf32, #tpu.memory_space<any>> -> memref<128xf32, #tpu.memory_space<any>>
    %c0_i32_31 = arith.constant 0 : i32
    %70 = tpu.memref_slice %arg3[%c7_i32_28, %c0_i32_31] : memref<256x128xf32, #tpu.memory_space<vmem>> -> memref<1x128xf32, #tpu.memory_space<vmem>>
    %71 = tpu.memref_squeeze %70 : memref<1x128xf32, #tpu.memory_space<vmem>> -> memref<128xf32, #tpu.memory_space<vmem>>
    %72 = tpu.memref_slice %arg4[%c7_i32_29] : memref<8x!tpu.dma_semaphore, #tpu.memory_space<semaphore_mem>> -> memref<1x!tpu.dma_semaphore, #tpu.memory_space<semaphore_mem>>
    %73 = tpu.memref_squeeze %72 : memref<1x!tpu.dma_semaphore, #tpu.memory_space<semaphore_mem>> -> memref<!tpu.dma_semaphore, #tpu.memory_space<semaphore_mem>>
    tpu.enqueue_dma source(%69 : memref<128xf32, #tpu.memory_space<any>>) target(%71 : memref<128xf32, #tpu.memory_space<vmem>>) target_semaphore(%73 : memref<!tpu.dma_semaphore, #tpu.memory_space<semaphore_mem>>)
    %c0_i32_32 = arith.constant 0 : i32
    %c248_i32 = arith.constant 248 : i32
    %74 = arith.addi %c0_i32_32, %c248_i32 : i32
    %c1_i32_33 = arith.constant 1 : i32
    scf.for %arg5 = %c0_i32_32 to %74 step %c1_i32_33  : i32 {
      %c1_i32_68 = arith.constant 1 : i32
      %147 = arith.muli %arg5, %c1_i32_68 : i32
      %c0_i32_69 = arith.constant 0 : i32
      %148 = arith.addi %c0_i32_69, %147 : i32
      %149 = arith.addi %1, %148 : i32
      %150 = arith.index_cast %149 : i32 to index
      %151 = memref.load %arg1[%150] : memref<512xi32, #tpu.memory_space<smem>>
      %c8_i32 = arith.constant 8 : i32
      %c0_i32_70 = arith.constant 0 : i32
      %152 = arith.cmpi eq, %c8_i32, %c0_i32_70 : i32
      %c1_i32_71 = arith.constant 1 : i32
      %153 = arith.select %152, %c1_i32_71, %c8_i32 : i32
      %154 = arith.remsi %148, %153 : i32
      %c0_i32_72 = arith.constant 0 : i32
      %155 = arith.cmpi ne, %154, %c0_i32_72 : i32
      %c0_i32_73 = arith.constant 0 : i32
      %156 = arith.cmpi slt, %154, %c0_i32_73 : i32
      %c0_i32_74 = arith.constant 0 : i32
      %157 = arith.cmpi slt, %153, %c0_i32_74 : i32
      %158 = arith.xori %156, %157 : i1
      %159 = arith.andi %158, %155 : i1
      %160 = arith.addi %154, %153 : i32
      %161 = arith.select %159, %160, %154 : i32
      %c0_i32_75 = arith.constant 0 : i32
      %162 = tpu.memref_slice %arg2[%151, %c0_i32_75] : memref<400003x128xf32, #tpu.memory_space<any>> -> memref<1x128xf32, #tpu.memory_space<any>>
      %163 = tpu.memref_squeeze %162 : memref<1x128xf32, #tpu.memory_space<any>> -> memref<128xf32, #tpu.memory_space<any>>
      %c0_i32_76 = arith.constant 0 : i32
      %164 = tpu.memref_slice %arg3[%148, %c0_i32_76] : memref<256x128xf32, #tpu.memory_space<vmem>> -> memref<1x128xf32, #tpu.memory_space<vmem>>
      %165 = tpu.memref_squeeze %164 : memref<1x128xf32, #tpu.memory_space<vmem>> -> memref<128xf32, #tpu.memory_space<vmem>>
      %166 = tpu.memref_slice %arg4[%161] : memref<8x!tpu.dma_semaphore, #tpu.memory_space<semaphore_mem>> -> memref<1x!tpu.dma_semaphore, #tpu.memory_space<semaphore_mem>>
      %167 = tpu.memref_squeeze %166 : memref<1x!tpu.dma_semaphore, #tpu.memory_space<semaphore_mem>> -> memref<!tpu.dma_semaphore, #tpu.memory_space<semaphore_mem>>
      tpu.wait_dma2 semaphore(%167 : memref<!tpu.dma_semaphore, #tpu.memory_space<semaphore_mem>>) src(%163 : memref<128xf32, #tpu.memory_space<any>>) dst(%165 : memref<128xf32, #tpu.memory_space<vmem>>)
      %c8_i32_77 = arith.constant 8 : i32
      %168 = arith.addi %148, %c8_i32_77 : i32
      %169 = arith.addi %1, %168 : i32
      %170 = arith.index_cast %169 : i32 to index
      %171 = memref.load %arg1[%170] : memref<512xi32, #tpu.memory_space<smem>>
      %c8_i32_78 = arith.constant 8 : i32
      %c0_i32_79 = arith.constant 0 : i32
      %172 = arith.cmpi eq, %c8_i32_78, %c0_i32_79 : i32
      %c1_i32_80 = arith.constant 1 : i32
      %173 = arith.select %172, %c1_i32_80, %c8_i32_78 : i32
      %174 = arith.remsi %168, %173 : i32
      %c0_i32_81 = arith.constant 0 : i32
      %175 = arith.cmpi ne, %174, %c0_i32_81 : i32
      %c0_i32_82 = arith.constant 0 : i32
      %176 = arith.cmpi slt, %174, %c0_i32_82 : i32
      %c0_i32_83 = arith.constant 0 : i32
      %177 = arith.cmpi slt, %173, %c0_i32_83 : i32
      %178 = arith.xori %176, %177 : i1
      %179 = arith.andi %178, %175 : i1
      %180 = arith.addi %174, %173 : i32
      %181 = arith.select %179, %180, %174 : i32
      %c0_i32_84 = arith.constant 0 : i32
      %182 = tpu.memref_slice %arg2[%171, %c0_i32_84] : memref<400003x128xf32, #tpu.memory_space<any>> -> memref<1x128xf32, #tpu.memory_space<any>>
      %183 = tpu.memref_squeeze %182 : memref<1x128xf32, #tpu.memory_space<any>> -> memref<128xf32, #tpu.memory_space<any>>
      %c0_i32_85 = arith.constant 0 : i32
      %184 = tpu.memref_slice %arg3[%168, %c0_i32_85] : memref<256x128xf32, #tpu.memory_space<vmem>> -> memref<1x128xf32, #tpu.memory_space<vmem>>
      %185 = tpu.memref_squeeze %184 : memref<1x128xf32, #tpu.memory_space<vmem>> -> memref<128xf32, #tpu.memory_space<vmem>>
      %186 = tpu.memref_slice %arg4[%181] : memref<8x!tpu.dma_semaphore, #tpu.memory_space<semaphore_mem>> -> memref<1x!tpu.dma_semaphore, #tpu.memory_space<semaphore_mem>>
      %187 = tpu.memref_squeeze %186 : memref<1x!tpu.dma_semaphore, #tpu.memory_space<semaphore_mem>> -> memref<!tpu.dma_semaphore, #tpu.memory_space<semaphore_mem>>
      tpu.enqueue_dma source(%183 : memref<128xf32, #tpu.memory_space<any>>) target(%185 : memref<128xf32, #tpu.memory_space<vmem>>) target_semaphore(%187 : memref<!tpu.dma_semaphore, #tpu.memory_space<semaphore_mem>>)
    }
    %c248_i32_34 = arith.constant 248 : i32
    %c248_i32_35 = arith.constant 248 : i32
    %75 = arith.addi %1, %c248_i32_35 : i32
    %76 = arith.index_cast %75 : i32 to index
    %77 = memref.load %arg1[%76] : memref<512xi32, #tpu.memory_space<smem>>
    %c248_i32_36 = arith.constant 248 : i32
    %c0_i32_37 = arith.constant 0 : i32
    %c0_i32_38 = arith.constant 0 : i32
    %78 = tpu.memref_slice %arg2[%77, %c0_i32_38] : memref<400003x128xf32, #tpu.memory_space<any>> -> memref<1x128xf32, #tpu.memory_space<any>>
    %79 = tpu.memref_squeeze %78 : memref<1x128xf32, #tpu.memory_space<any>> -> memref<128xf32, #tpu.memory_space<any>>
    %c0_i32_39 = arith.constant 0 : i32
    %80 = tpu.memref_slice %arg3[%c248_i32_36, %c0_i32_39] : memref<256x128xf32, #tpu.memory_space<vmem>> -> memref<1x128xf32, #tpu.memory_space<vmem>>
    %81 = tpu.memref_squeeze %80 : memref<1x128xf32, #tpu.memory_space<vmem>> -> memref<128xf32, #tpu.memory_space<vmem>>
    %82 = tpu.memref_slice %arg4[%c0_i32_37] : memref<8x!tpu.dma_semaphore, #tpu.memory_space<semaphore_mem>> -> memref<1x!tpu.dma_semaphore, #tpu.memory_space<semaphore_mem>>
    %83 = tpu.memref_squeeze %82 : memref<1x!tpu.dma_semaphore, #tpu.memory_space<semaphore_mem>> -> memref<!tpu.dma_semaphore, #tpu.memory_space<semaphore_mem>>
    tpu.wait_dma2 semaphore(%83 : memref<!tpu.dma_semaphore, #tpu.memory_space<semaphore_mem>>) src(%79 : memref<128xf32, #tpu.memory_space<any>>) dst(%81 : memref<128xf32, #tpu.memory_space<vmem>>)
    %c249_i32 = arith.constant 249 : i32
    %84 = arith.addi %1, %c249_i32 : i32
    %85 = arith.index_cast %84 : i32 to index
    %86 = memref.load %arg1[%85] : memref<512xi32, #tpu.memory_space<smem>>
    %c249_i32_40 = arith.constant 249 : i32
    %c1_i32_41 = arith.constant 1 : i32
    %c0_i32_42 = arith.constant 0 : i32
    %87 = tpu.memref_slice %arg2[%86, %c0_i32_42] : memref<400003x128xf32, #tpu.memory_space<any>> -> memref<1x128xf32, #tpu.memory_space<any>>
    %88 = tpu.memref_squeeze %87 : memref<1x128xf32, #tpu.memory_space<any>> -> memref<128xf32, #tpu.memory_space<any>>
    %c0_i32_43 = arith.constant 0 : i32
    %89 = tpu.memref_slice %arg3[%c249_i32_40, %c0_i32_43] : memref<256x128xf32, #tpu.memory_space<vmem>> -> memref<1x128xf32, #tpu.memory_space<vmem>>
    %90 = tpu.memref_squeeze %89 : memref<1x128xf32, #tpu.memory_space<vmem>> -> memref<128xf32, #tpu.memory_space<vmem>>
    %91 = tpu.memref_slice %arg4[%c1_i32_41] : memref<8x!tpu.dma_semaphore, #tpu.memory_space<semaphore_mem>> -> memref<1x!tpu.dma_semaphore, #tpu.memory_space<semaphore_mem>>
    %92 = tpu.memref_squeeze %91 : memref<1x!tpu.dma_semaphore, #tpu.memory_space<semaphore_mem>> -> memref<!tpu.dma_semaphore, #tpu.memory_space<semaphore_mem>>
    tpu.wait_dma2 semaphore(%92 : memref<!tpu.dma_semaphore, #tpu.memory_space<semaphore_mem>>) src(%88 : memref<128xf32, #tpu.memory_space<any>>) dst(%90 : memref<128xf32, #tpu.memory_space<vmem>>)
    %c250_i32 = arith.constant 250 : i32
    %93 = arith.addi %1, %c250_i32 : i32
    %94 = arith.index_cast %93 : i32 to index
    %95 = memref.load %arg1[%94] : memref<512xi32, #tpu.memory_space<smem>>
    %c250_i32_44 = arith.constant 250 : i32
    %c2_i32_45 = arith.constant 2 : i32
    %c0_i32_46 = arith.constant 0 : i32
    %96 = tpu.memref_slice %arg2[%95, %c0_i32_46] : memref<400003x128xf32, #tpu.memory_space<any>> -> memref<1x128xf32, #tpu.memory_space<any>>
    %97 = tpu.memref_squeeze %96 : memref<1x128xf32, #tpu.memory_space<any>> -> memref<128xf32, #tpu.memory_space<any>>
    %c0_i32_47 = arith.constant 0 : i32
    %98 = tpu.memref_slice %arg3[%c250_i32_44, %c0_i32_47] : memref<256x128xf32, #tpu.memory_space<vmem>> -> memref<1x128xf32, #tpu.memory_space<vmem>>
    %99 = tpu.memref_squeeze %98 : memref<1x128xf32, #tpu.memory_space<vmem>> -> memref<128xf32, #tpu.memory_space<vmem>>
    %100 = tpu.memref_slice %arg4[%c2_i32_45] : memref<8x!tpu.dma_semaphore, #tpu.memory_space<semaphore_mem>> -> memref<1x!tpu.dma_semaphore, #tpu.memory_space<semaphore_mem>>
    %101 = tpu.memref_squeeze %100 : memref<1x!tpu.dma_semaphore, #tpu.memory_space<semaphore_mem>> -> memref<!tpu.dma_semaphore, #tpu.memory_space<semaphore_mem>>
    tpu.wait_dma2 semaphore(%101 : memref<!tpu.dma_semaphore, #tpu.memory_space<semaphore_mem>>) src(%97 : memref<128xf32, #tpu.memory_space<any>>) dst(%99 : memref<128xf32, #tpu.memory_space<vmem>>)
    %c251_i32 = arith.constant 251 : i32
    %102 = arith.addi %1, %c251_i32 : i32
    %103 = arith.index_cast %102 : i32 to index
    %104 = memref.load %arg1[%103] : memref<512xi32, #tpu.memory_space<smem>>
    %c251_i32_48 = arith.constant 251 : i32
    %c3_i32_49 = arith.constant 3 : i32
    %c0_i32_50 = arith.constant 0 : i32
    %105 = tpu.memref_slice %arg2[%104, %c0_i32_50] : memref<400003x128xf32, #tpu.memory_space<any>> -> memref<1x128xf32, #tpu.memory_space<any>>
    %106 = tpu.memref_squeeze %105 : memref<1x128xf32, #tpu.memory_space<any>> -> memref<128xf32, #tpu.memory_space<any>>
    %c0_i32_51 = arith.constant 0 : i32
    %107 = tpu.memref_slice %arg3[%c251_i32_48, %c0_i32_51] : memref<256x128xf32, #tpu.memory_space<vmem>> -> memref<1x128xf32, #tpu.memory_space<vmem>>
    %108 = tpu.memref_squeeze %107 : memref<1x128xf32, #tpu.memory_space<vmem>> -> memref<128xf32, #tpu.memory_space<vmem>>
    %109 = tpu.memref_slice %arg4[%c3_i32_49] : memref<8x!tpu.dma_semaphore, #tpu.memory_space<semaphore_mem>> -> memref<1x!tpu.dma_semaphore, #tpu.memory_space<semaphore_mem>>
    %110 = tpu.memref_squeeze %109 : memref<1x!tpu.dma_semaphore, #tpu.memory_space<semaphore_mem>> -> memref<!tpu.dma_semaphore, #tpu.memory_space<semaphore_mem>>
    tpu.wait_dma2 semaphore(%110 : memref<!tpu.dma_semaphore, #tpu.memory_space<semaphore_mem>>) src(%106 : memref<128xf32, #tpu.memory_space<any>>) dst(%108 : memref<128xf32, #tpu.memory_space<vmem>>)
    %c252_i32 = arith.constant 252 : i32
    %111 = arith.addi %1, %c252_i32 : i32
    %112 = arith.index_cast %111 : i32 to index
    %113 = memref.load %arg1[%112] : memref<512xi32, #tpu.memory_space<smem>>
    %c252_i32_52 = arith.constant 252 : i32
    %c4_i32_53 = arith.constant 4 : i32
    %c0_i32_54 = arith.constant 0 : i32
    %114 = tpu.memref_slice %arg2[%113, %c0_i32_54] : memref<400003x128xf32, #tpu.memory_space<any>> -> memref<1x128xf32, #tpu.memory_space<any>>
    %115 = tpu.memref_squeeze %114 : memref<1x128xf32, #tpu.memory_space<any>> -> memref<128xf32, #tpu.memory_space<any>>
    %c0_i32_55 = arith.constant 0 : i32
    %116 = tpu.memref_slice %arg3[%c252_i32_52, %c0_i32_55] : memref<256x128xf32, #tpu.memory_space<vmem>> -> memref<1x128xf32, #tpu.memory_space<vmem>>
    %117 = tpu.memref_squeeze %116 : memref<1x128xf32, #tpu.memory_space<vmem>> -> memref<128xf32, #tpu.memory_space<vmem>>
    %118 = tpu.memref_slice %arg4[%c4_i32_53] : memref<8x!tpu.dma_semaphore, #tpu.memory_space<semaphore_mem>> -> memref<1x!tpu.dma_semaphore, #tpu.memory_space<semaphore_mem>>
    %119 = tpu.memref_squeeze %118 : memref<1x!tpu.dma_semaphore, #tpu.memory_space<semaphore_mem>> -> memref<!tpu.dma_semaphore, #tpu.memory_space<semaphore_mem>>
    tpu.wait_dma2 semaphore(%119 : memref<!tpu.dma_semaphore, #tpu.memory_space<semaphore_mem>>) src(%115 : memref<128xf32, #tpu.memory_space<any>>) dst(%117 : memref<128xf32, #tpu.memory_space<vmem>>)
    %c253_i32 = arith.constant 253 : i32
    %120 = arith.addi %1, %c253_i32 : i32
    %121 = arith.index_cast %120 : i32 to index
    %122 = memref.load %arg1[%121] : memref<512xi32, #tpu.memory_space<smem>>
    %c253_i32_56 = arith.constant 253 : i32
    %c5_i32_57 = arith.constant 5 : i32
    %c0_i32_58 = arith.constant 0 : i32
    %123 = tpu.memref_slice %arg2[%122, %c0_i32_58] : memref<400003x128xf32, #tpu.memory_space<any>> -> memref<1x128xf32, #tpu.memory_space<any>>
    %124 = tpu.memref_squeeze %123 : memref<1x128xf32, #tpu.memory_space<any>> -> memref<128xf32, #tpu.memory_space<any>>
    %c0_i32_59 = arith.constant 0 : i32
    %125 = tpu.memref_slice %arg3[%c253_i32_56, %c0_i32_59] : memref<256x128xf32, #tpu.memory_space<vmem>> -> memref<1x128xf32, #tpu.memory_space<vmem>>
    %126 = tpu.memref_squeeze %125 : memref<1x128xf32, #tpu.memory_space<vmem>> -> memref<128xf32, #tpu.memory_space<vmem>>
    %127 = tpu.memref_slice %arg4[%c5_i32_57] : memref<8x!tpu.dma_semaphore, #tpu.memory_space<semaphore_mem>> -> memref<1x!tpu.dma_semaphore, #tpu.memory_space<semaphore_mem>>
    %128 = tpu.memref_squeeze %127 : memref<1x!tpu.dma_semaphore, #tpu.memory_space<semaphore_mem>> -> memref<!tpu.dma_semaphore, #tpu.memory_space<semaphore_mem>>
    tpu.wait_dma2 semaphore(%128 : memref<!tpu.dma_semaphore, #tpu.memory_space<semaphore_mem>>) src(%124 : memref<128xf32, #tpu.memory_space<any>>) dst(%126 : memref<128xf32, #tpu.memory_space<vmem>>)
    %c254_i32 = arith.constant 254 : i32
    %129 = arith.addi %1, %c254_i32 : i32
    %130 = arith.index_cast %129 : i32 to index
    %131 = memref.load %arg1[%130] : memref<512xi32, #tpu.memory_space<smem>>
    %c254_i32_60 = arith.constant 254 : i32
    %c6_i32_61 = arith.constant 6 : i32
    %c0_i32_62 = arith.constant 0 : i32
    %132 = tpu.memref_slice %arg2[%131, %c0_i32_62] : memref<400003x128xf32, #tpu.memory_space<any>> -> memref<1x128xf32, #tpu.memory_space<any>>
    %133 = tpu.memref_squeeze %132 : memref<1x128xf32, #tpu.memory_space<any>> -> memref<128xf32, #tpu.memory_space<any>>
    %c0_i32_63 = arith.constant 0 : i32
    %134 = tpu.memref_slice %arg3[%c254_i32_60, %c0_i32_63] : memref<256x128xf32, #tpu.memory_space<vmem>> -> memref<1x128xf32, #tpu.memory_space<vmem>>
    %135 = tpu.memref_squeeze %134 : memref<1x128xf32, #tpu.memory_space<vmem>> -> memref<128xf32, #tpu.memory_space<vmem>>
    %136 = tpu.memref_slice %arg4[%c6_i32_61] : memref<8x!tpu.dma_semaphore, #tpu.memory_space<semaphore_mem>> -> memref<1x!tpu.dma_semaphore, #tpu.memory_space<semaphore_mem>>
    %137 = tpu.memref_squeeze %136 : memref<1x!tpu.dma_semaphore, #tpu.memory_space<semaphore_mem>> -> memref<!tpu.dma_semaphore, #tpu.memory_space<semaphore_mem>>
    tpu.wait_dma2 semaphore(%137 : memref<!tpu.dma_semaphore, #tpu.memory_space<semaphore_mem>>) src(%133 : memref<128xf32, #tpu.memory_space<any>>) dst(%135 : memref<128xf32, #tpu.memory_space<vmem>>)
    %c255_i32 = arith.constant 255 : i32
    %138 = arith.addi %1, %c255_i32 : i32
    %139 = arith.index_cast %138 : i32 to index
    %140 = memref.load %arg1[%139] : memref<512xi32, #tpu.memory_space<smem>>
    %c255_i32_64 = arith.constant 255 : i32
    %c7_i32_65 = arith.constant 7 : i32
    %c0_i32_66 = arith.constant 0 : i32
    %141 = tpu.memref_slice %arg2[%140, %c0_i32_66] : memref<400003x128xf32, #tpu.memory_space<any>> -> memref<1x128xf32, #tpu.memory_space<any>>
    %142 = tpu.memref_squeeze %141 : memref<1x128xf32, #tpu.memory_space<any>> -> memref<128xf32, #tpu.memory_space<any>>
    %c0_i32_67 = arith.constant 0 : i32
    %143 = tpu.memref_slice %arg3[%c255_i32_64, %c0_i32_67] : memref<256x128xf32, #tpu.memory_space<vmem>> -> memref<1x128xf32, #tpu.memory_space<vmem>>
    %144 = tpu.memref_squeeze %143 : memref<1x128xf32, #tpu.memory_space<vmem>> -> memref<128xf32, #tpu.memory_space<vmem>>
    %145 = tpu.memref_slice %arg4[%c7_i32_65] : memref<8x!tpu.dma_semaphore, #tpu.memory_space<semaphore_mem>> -> memref<1x!tpu.dma_semaphore, #tpu.memory_space<semaphore_mem>>
    %146 = tpu.memref_squeeze %145 : memref<1x!tpu.dma_semaphore, #tpu.memory_space<semaphore_mem>> -> memref<!tpu.dma_semaphore, #tpu.memory_space<semaphore_mem>>
    tpu.wait_dma2 semaphore(%146 : memref<!tpu.dma_semaphore, #tpu.memory_space<semaphore_mem>>) src(%142 : memref<128xf32, #tpu.memory_space<any>>) dst(%144 : memref<128xf32, #tpu.memory_space<vmem>>)
    return
  }
  func.func @transform_1(%arg0: i32, %arg1: memref<512xi32, #tpu.memory_space<smem>>) -> (i32, i32) {
    %c0_i32 = arith.constant 0 : i32
    %c0_i32_0 = arith.constant 0 : i32
    return %arg0, %c0_i32 : i32, i32
  }
}

</mosaic_0001>

<bundles_post_ra>
// kernel: glove_embedding_forward.1
= control target key start
LH: loop header
LB: loop body
LE: loop exit
PB: predicated region body
PF: predicated region fallthrough
CT: control target
= control target key end

     0   :  { %s876_s0 = inlined_call_operand.vmem [shape: s32[512], index: 0, kind: input, shape index: {}]   ;;  %s877_s1 = inlined_call_operand.hbm [shape: f32[400003,128], index: 1, kind: input, shape index: {}]   ;;  %s878_s2 = inlined_call_operand.vmem [shape: f32[512,128], index: 2, kind: output, shape index: {}]  }
   0x1   :  { %s7_s11 = sshll.u32 %s876_s0, 4  ;;  %s8_s11 = int_to_ptr.vmem [resolvable:$true] %s7_s11 }
   0x2   :  { %s447_s12 = scalar_lea.vmem %s8_s11, 64  ;;  %p452_p1 = scmp.lt.s32.totalorder %s8_s11, %s8_s11 }
   0x3   :  { %p448_p0 = scmp.ne.s32.totalorder %s8_s11, %s447_s12  ;;  %p453_p2 = scmp.lt.s32.totalorder %s447_s12, %s447_s12 }
   0x5   :  { %p454_p3 = por %p453_p2, %p452_p1 }
   0x7   :  { %p455_p4 = pnand %p454_p3, %p448_p0 }
   0x9   :  { %458 = shalt.err (!%p455_p4)  }
   0xa   :  { %s693_s13 = smov [#allocation4]  }
   0xb   :  { %10 = dma.vmem_to_smem %s8_s11, 64, %s693_s13, [#allocation3] }
   0xc   :  { %665 = dma.done.wait [#allocation3], 64 }
   0xd   :  { %666 = vsyncadd [#allocation3], 4294967232 }
   0xe   :  { %12 = sfence }
   0xf   :  { %s712_s14 = smov 0  }
  0x10 LB: > { %p401_p5 = scmp.ge.s32.totalorder %s687_s14, 2  ;;  %s687_s14 = sphi %s712_s14, %s18_s14  }
  0x11   : > { %s402_s0 = sshll.u32 (!%p401_p5), %s687_s14, 5  ;;  %s720_s15 = sshll.u32 (!%p401_p5), %s687_s14, 8 }
  0x12   : > { %43 = sbr.rel (%p401_p5) target bundleno = 248 (0xf8), region = 12  ;;  %p52_p6 = scmp.lt.s32.totalorder (!%p401_p5), %s402_s0, 63 }
  0x13   : > { %s58_s16 = sld [smem:[#allocation4 + %s720_s15]] (!%p401_p5)  ;;  %s72_s17 = sadd.s32 (!%p401_p5), 1, %s720_s15 }
  0x14   : > { %s89_s18 = sadd.s32 (!%p401_p5), 2, %s720_s15  ;;  %s725_s19 = sld [smem:[#allocation4 + %s72_s17]] (!%p401_p5) }
  0x15   : > { %s106_s20 = sadd.s32 (!%p401_p5), 3, %s720_s15  ;;  %s728_s22 = sld [smem:[#allocation4 + %s89_s18]] (!%p401_p5) }
  0x16   : > { %s735_s26 = sld [smem:[#allocation4 + %s106_s20]] (!%p401_p5)  ;;  %s744_s7 = scalar_lea.hbm (!%p401_p5), %s877_s1, 6400128 }
  0x17   : > { %s880_s0 = smov (!%p52_p6, %s402_s0), 63 }
  0x18   : > { %s403_s21 = sshll.u32 %s880_s0, 3 }
  0x19   : > { %s733_s25 = scalar_lea.vmem %s878_s2, %s403_s21  ;;  %s405_s27 = sshll.u32 %s58_s16, 4 }
  0x1a   : > { %s68_s28 = sshll.u32 %s733_s25, 4  ;;  %s60_s3 = scalar_lea.hbm %s877_s1, %s405_s27  ;;  %s69_s28 = int_to_ptr.vmem [resolvable:$true] %s68_s28 }
  0x1b   : > { %s459_s4 = scalar_lea.hbm %s60_s3, 16  ;;  %p462_p8 = scmp.lt.s32.totalorder %s60_s3, %s877_s1 }
  0x1c   : > { %p460_p7 = scmp.ne.s32.totalorder %s60_s3, %s459_s4  ;;  %p463_p9 = scmp.lt.s32.totalorder %s744_s7, %s459_s4 }
  0x1e   : > { %p464_p10 = por %p463_p9, %p462_p8 }
  0x20   : > { %p465_p11 = pnand %p464_p10, %p460_p7 }
  0x22   : > { %468 = shalt.err (!%p465_p11)  }
  0x23   : > { %s469_s10 = scalar_lea.vmem %s69_s28, 16  ;;  %s471_s13 = sshll.u32 %s878_s2, 4  ;;  %s753_s13 = int_to_ptr.vmem [resolvable:$false] %s471_s13 }
  0x24   : > { %p470_p12 = scmp.ne.s32.totalorder %s69_s28, %s469_s10  ;;  %s756_s0 = scalar_lea.vmem %s753_s13, 8192 }
  0x25   : > { %p474_p13 = scmp.lt.s32.totalorder %s69_s28, %s753_s13  ;;  %p475_p0 = scmp.lt.s32.totalorder %s756_s0, %s469_s10 }
  0x27   : > { %p476_p1 = por %p475_p0, %p474_p13 }
  0x29   : > { %p477_p2 = pnand %p476_p1, %p470_p12 }
  0x2b   : > { %480 = shalt.err (!%p477_p2)  }
  0x2c   : > { %71 = dma.hbm_to_vmem [thread:$0]  %s60_s3, 16, %s69_s28, [#allocation2] }
  0x2d   : > { %s406_s16 = sshll.u32 %s725_s19, 4  ;;  %s76_s17 = scalar_lea.vmem %s733_s25, 1 }
  0x2e   : > { %s75_s21 = scalar_lea.hbm %s877_s1, %s406_s16  ;;  %s85_s23 = sshll.u32 %s76_s17, 4  ;;  %s86_s23 = int_to_ptr.vmem [resolvable:$true] %s85_s23 }
  0x2f   : > { %s407_s24 = sshll.u32 %s728_s22, 4  ;;  %s481_s27 = scalar_lea.hbm %s75_s21, 16 }
  0x30   : > { %p482_p3 = scmp.ne.s32.totalorder %s75_s21, %s481_s27  ;;  %p484_p4 = scmp.lt.s32.totalorder %s75_s21, %s877_s1 }
  0x31   : > { %p485_p5 = scmp.lt.s32.totalorder %s744_s7, %s481_s27 }
  0x33   : > { %p486_p6 = por %p485_p5, %p484_p4 }
  0x35   : > { %p487_p7 = pnand %p486_p6, %p482_p3 }
  0x37   : > { %490 = shalt.err (!%p487_p7)  }
  0x38   : > { %s491_s28 = scalar_lea.vmem %s86_s23, 16  ;;  %p496_p9 = scmp.lt.s32.totalorder %s86_s23, %s753_s13 }
  0x39   : > { %p492_p8 = scmp.ne.s32.totalorder %s86_s23, %s491_s28  ;;  %p497_p10 = scmp.lt.s32.totalorder %s756_s0, %s491_s28 }
  0x3b   : > { %p498_p11 = por %p497_p10, %p496_p9 }
  0x3d   : > { %p499_p12 = pnand %p498_p11, %p492_p8 }
  0x3f   : > { %502 = shalt.err (!%p499_p12)  }
  0x40   : > { %88 = dma.hbm_to_vmem [thread:$0]  %s75_s21, 16, %s86_s23, [#allocation2 + $0x1] }
  0x41   : > { %s92_s3 = scalar_lea.hbm %s877_s1, %s407_s24  ;;  %s93_s4 = scalar_lea.vmem %s733_s25, 2 }
  0x42   : > { %s102_s5 = sshll.u32 %s93_s4, 4  ;;  %s408_s6 = sshll.u32 %s735_s26, 4  ;;  %s103_s5 = int_to_ptr.vmem [resolvable:$true] %s102_s5 }
  0x43   : > { %s780_s10 = scalar_lea.hbm %s877_s1, %s408_s6  ;;  %s503_s11 = scalar_lea.hbm %s92_s3, 16 }
  0x44   : > { %p504_p13 = scmp.ne.s32.totalorder %s92_s3, %s503_s11  ;;  %p506_p0 = scmp.lt.s32.totalorder %s92_s3, %s877_s1 }
  0x45   : > { %p507_p1 = scmp.lt.s32.totalorder %s744_s7, %s503_s11 }
  0x47   : > { %p508_p2 = por %p507_p1, %p506_p0 }
  0x49   : > { %p509_p3 = pnand %p508_p2, %p504_p13 }
  0x4b   : > { %512 = shalt.err (!%p509_p3)  }
  0x4c   : > { %s513_s17 = scalar_lea.vmem %s103_s5, 16  ;;  %p518_p5 = scmp.lt.s32.totalorder %s103_s5, %s753_s13 }
  0x4d   : > { %p514_p4 = scmp.ne.s32.totalorder %s103_s5, %s513_s17  ;;  %p519_p6 = scmp.lt.s32.totalorder %s756_s0, %s513_s17 }
  0x4f   : > { %p520_p7 = por %p519_p6, %p518_p5 }
  0x51   : > { %p521_p8 = pnand %p520_p7, %p514_p4 }
  0x53   : > { %524 = shalt.err (!%p521_p8)  }
  0x54   : > { %105 = dma.hbm_to_vmem [thread:$0]  %s92_s3, 16, %s103_s5, [#allocation2 + $0x2] }
  0x55   : > { %s110_s26 = scalar_lea.vmem %s733_s25, 3  ;;  %s123_s18 = sadd.s32 4, %s720_s15 }
  0x56   : > { %s119_s20 = sshll.u32 %s110_s26, 4  ;;  %s124_s21 = sld [smem:[#allocation4 + %s123_s18]]  ;;  %s120_s20 = int_to_ptr.vmem [resolvable:$true] %s119_s20 }
  0x57   : > { %s127_s23 = scalar_lea.vmem %s733_s25, 4  ;;  %s525_s24 = scalar_lea.hbm %s780_s10, 16 }
  0x58   : > { %p526_p9 = scmp.ne.s32.totalorder %s780_s10, %s525_s24  ;;  %p528_p10 = scmp.lt.s32.totalorder %s780_s10, %s877_s1 }
  0x59   : > { %p529_p11 = scmp.lt.s32.totalorder %s744_s7, %s525_s24 }
  0x5b   : > { %p530_p12 = por %p529_p11, %p528_p10 }
  0x5d   : > { %p531_p13 = pnand %p530_p12, %p526_p9 }
  0x5f   : > { %534 = shalt.err (!%p531_p13)  }
  0x60   : > { %s535_s30 = scalar_lea.vmem %s120_s20, 16  ;;  %p540_p1 = scmp.lt.s32.totalorder %s120_s20, %s753_s13 }
  0x61   : > { %p536_p0 = scmp.ne.s32.totalorder %s120_s20, %s535_s30  ;;  %p541_p2 = scmp.lt.s32.totalorder %s756_s0, %s535_s30 }
  0x63   : > { %p542_p3 = por %p541_p2, %p540_p1 }
  0x65   : > { %p543_p4 = pnand %p542_p3, %p536_p0 }
  0x67   : > { %546 = shalt.err (!%p543_p4)  }
  0x68   : > { %122 = dma.hbm_to_vmem [thread:$0]  %s780_s10, 16, %s120_s20, [#allocation2 + $0x3] }
  0x69   : > { %s136_s28 = sshll.u32 %s127_s23, 4  ;;  %s140_s19 = sadd.s32 5, %s720_s15  ;;  %s137_s28 = int_to_ptr.vmem [resolvable:$true] %s136_s28 }
  0x6a   : > { %s141_s22 = sld [smem:[#allocation4 + %s140_s19]]  ;;  %s144_s3 = scalar_lea.vmem %s733_s25, 5 }
  0x6b   : > { %s157_s4 = sadd.s32 6, %s720_s15  ;;  %s409_s5 = sshll.u32 %s124_s21, 4 }
  0x6c   : > { %s153_s6 = sshll.u32 %s144_s3, 4  ;;  %s126_s11 = scalar_lea.hbm %s877_s1, %s409_s5  ;;  %s807_s6 = int_to_ptr.vmem [resolvable:$true] %s153_s6 }
  0x6d   : > { %s547_s12 = scalar_lea.hbm %s126_s11, 16  ;;  %p550_p6 = scmp.lt.s32.totalorder %s126_s11, %s877_s1 }
  0x6e   : > { %p548_p5 = scmp.ne.s32.totalorder %s126_s11, %s547_s12  ;;  %p551_p7 = scmp.lt.s32.totalorder %s744_s7, %s547_s12 }
  0x70   : > { %p552_p8 = por %p551_p7, %p550_p6 }
  0x72   : > { %p553_p9 = pnand %p552_p8, %p548_p5 }
  0x74   : > { %556 = shalt.err (!%p553_p9)  }
  0x75   : > { %s557_s10 = scalar_lea.vmem %s137_s28, 16  ;;  %p562_p11 = scmp.lt.s32.totalorder %s137_s28, %s753_s13 }
  0x76   : > { %p558_p10 = scmp.ne.s32.totalorder %s137_s28, %s557_s10  ;;  %p563_p12 = scmp.lt.s32.totalorder %s756_s0, %s557_s10 }
  0x78   : > { %p564_p13 = por %p563_p12, %p562_p11 }
  0x7a   : > { %p565_p0 = pnand %p564_p13, %p558_p10 }
  0x7c   : > { %568 = shalt.err (!%p565_p0)  }
  0x7d   : > { %139 = dma.hbm_to_vmem [thread:$0]  %s126_s11, 16, %s137_s28, [#allocation2 + $0x4] }
  0x7e   : > { %s158_s26 = sld [smem:[#allocation4 + %s157_s4]]  ;;  %s161_s18 = scalar_lea.vmem %s733_s25, 6 }
  0x7f   : > { %s410_s20 = sshll.u32 %s141_s22, 4  ;;  %s170_s27 = sshll.u32 %s161_s18, 4  ;;  %s171_s27 = int_to_ptr.vmem [resolvable:$true] %s170_s27 }
  0x80   : > { %s143_s24 = scalar_lea.hbm %s877_s1, %s410_s20 }
  0x81   : > { %s569_s29 = scalar_lea.hbm %s143_s24, 16  ;;  %p572_p2 = scmp.lt.s32.totalorder %s143_s24, %s877_s1 }
  0x82   : > { %p570_p1 = scmp.ne.s32.totalorder %s143_s24, %s569_s29  ;;  %p573_p3 = scmp.lt.s32.totalorder %s744_s7, %s569_s29 }
  0x84   : > { %p574_p4 = por %p573_p3, %p572_p2 }
  0x86   : > { %p575_p5 = pnand %p574_p4, %p570_p1 }
  0x88   : > { %578 = shalt.err (!%p575_p5)  }
  0x89   : > { %s579_s28 = scalar_lea.vmem %s807_s6, 16  ;;  %p584_p7 = scmp.lt.s32.totalorder %s807_s6, %s753_s13 }
  0x8a   : > { %p580_p6 = scmp.ne.s32.totalorder %s807_s6, %s579_s28  ;;  %p585_p8 = scmp.lt.s32.totalorder %s756_s0, %s579_s28 }
  0x8c   : > { %p586_p9 = por %p585_p8, %p584_p7 }
  0x8e   : > { %p587_p10 = pnand %p586_p9, %p580_p6 }
  0x90   : > { %590 = shalt.err (!%p587_p10)  }
  0x91   : > { %156 = dma.hbm_to_vmem [thread:$0]  %s143_s24, 16, %s807_s6, [#allocation2 + $0x5] }
  0x92   : > { %s174_s22 = sadd.s32 7, %s720_s15  ;;  %s178_s3 = scalar_lea.vmem %s733_s25, 7 }
  0x93   : > { %s175_s4 = sld [smem:[#allocation4 + %s174_s22]]  ;;  %s411_s5 = sshll.u32 %s158_s26, 4 }
  0x94   : > { %s160_s11 = scalar_lea.hbm %s877_s1, %s411_s5  ;;  %s187_s12 = sshll.u32 %s178_s3, 4  ;;  %s188_s12 = int_to_ptr.vmem [resolvable:$true] %s187_s12 }
  0x95   : > { %s591_s16 = scalar_lea.hbm %s160_s11, 16  ;;  %p594_p12 = scmp.lt.s32.totalorder %s160_s11, %s877_s1 }
  0x96   : > { %p592_p11 = scmp.ne.s32.totalorder %s160_s11, %s591_s16  ;;  %p595_p13 = scmp.lt.s32.totalorder %s744_s7, %s591_s16 }
  0x98   : > { %p596_p0 = por %p595_p13, %p594_p12 }
  0x9a   : > { %p597_p1 = pnand %p596_p0, %p592_p11 }
  0x9c   : > { %600 = shalt.err (!%p597_p1)  }
  0x9d   : > { %s601_s6 = scalar_lea.vmem %s171_s27, 16  ;;  %p606_p3 = scmp.lt.s32.totalorder %s171_s27, %s753_s13 }
  0x9e   : > { %p602_p2 = scmp.ne.s32.totalorder %s171_s27, %s601_s6  ;;  %p607_p4 = scmp.lt.s32.totalorder %s756_s0, %s601_s6 }
  0xa0   : > { %p608_p5 = por %p607_p4, %p606_p3 }
  0xa2   : > { %p609_p6 = pnand %p608_p5, %p602_p2 }
  0xa4   : > { %612 = shalt.err (!%p609_p6)  }
  0xa5   : > { %173 = dma.hbm_to_vmem [thread:$0]  %s160_s11, 16, %s171_s27, [#allocation2 + $0x6] }
  0xa6   : > { %s412_s26 = sshll.u32 %s175_s4, 4 }
  0xa7   : > { %s177_s21 = scalar_lea.hbm %s877_s1, %s412_s26 }
  0xa8   : > { %s613_s23 = scalar_lea.hbm %s177_s21, 16  ;;  %p616_p8 = scmp.lt.s32.totalorder %s177_s21, %s877_s1 }
  0xa9   : > { %p614_p7 = scmp.ne.s32.totalorder %s177_s21, %s613_s23  ;;  %p617_p9 = scmp.lt.s32.totalorder %s744_s7, %s613_s23 }
  0xab   : > { %p618_p10 = por %p617_p9, %p616_p8 }
  0xad   : > { %p619_p11 = pnand %p618_p10, %p614_p7 }
  0xaf   : > { %622 = shalt.err (!%p619_p11)  }
  0xb0   : > { %s623_s30 = scalar_lea.vmem %s188_s12, 16  ;;  %p628_p13 = scmp.lt.s32.totalorder %s188_s12, %s753_s13 }
  0xb1   : > { %p624_p12 = scmp.ne.s32.totalorder %s188_s12, %s623_s30  ;;  %p629_p0 = scmp.lt.s32.totalorder %s756_s0, %s623_s30 }
  0xb3   : > { %p630_p1 = por %p629_p0, %p628_p13 }
  0xb5   : > { %p631_p2 = pnand %p630_p1, %p624_p12 }
  0xb7   : > { %634 = shalt.err (!%p631_p2)  }
  0xb8   : > { %190 = dma.hbm_to_vmem [thread:$0]  %s177_s21, 16, %s188_s12, [#allocation2 + $0x7] }
  0xb9   : > { %s849_s27 = smov 0  }
  0xba LB: >> { %p199_p3 = scmp.lt.s32.totalorder %s691_s27, 0  ;;  %s200_s19 = ssub.s32 0, %s691_s27  ;;  %s691_s27 = sphi %s849_s27, %s196_s27  }
  0xbb   : >> { %s413_s28 = smin.u32 %s691_s27, %s200_s19 }
  0xbc   : >> { %s202_s22 = sand.u32 7, %s413_s28  }
  0xbd   : >> { %s203_s3 = ssub.s32 0, %s202_s22 }
  0xbe   : >> { %s882_s3 = smov (!%p199_p3, %s203_s3), %s202_s22 }
  0xbf   : >> { %p415_p4 = scmp.lt.s32.totalorder %s882_s3, 0  ;;  %s209_s4 = sadd.s32 8, %s882_s3 }
  0xc1   : >> { %s884_s4 = smov (!%p415_p4, %s209_s4), %s882_s3 }
  0xc2   : >> { %s211_s5 = scalar_lea.sflag [#allocation2], %s884_s4 }
  0xc3   : >> { %667 = dma.done.wait %s211_s5, 16 }
  0xc4   : >> { %668 = vsyncadd %s211_s5, 4294967280  ;;  %s214_s8 = sadd.s32 8, %s691_s27  ;;  %s376_s9 = scalar_lea.vmem %s733_s25, %s691_s27 }
  0xc5   : >> { %s215_s11 = sadd.s32 %s720_s15, %s214_s8  ;;  %p217_p5 = scmp.lt.s32.totalorder %s214_s8, 0 }
  0xc6   : >> { %s216_s12 = sld [smem:[#allocation4 + %s215_s11]]  ;;  %s218_s16 = ssub.s32 0, %s214_s8 }
  0xc7   : >> { %s416_s17 = smin.u32 %s218_s16, %s214_s8  ;;  %s377_s10 = scalar_lea.vmem %s376_s9, 8 }
  0xc8   : >> { %s220_s6 = sand.u32 7, %s416_s17   ;;  %s240_s26 = sshll.u32 %s377_s10, 4  ;;  %s241_s26 = int_to_ptr.vmem [resolvable:$true] %s240_s26 }
  0xc9   : >> { %s221_s18 = ssub.s32 0, %s220_s6 }
  0xca   : >> { %s886_s18 = smov (!%p217_p5, %s221_s18), %s220_s6 }
  0xcb   : >> { %p418_p6 = scmp.lt.s32.totalorder %s886_s18, 0  ;;  %s227_s29 = sadd.s32 8, %s886_s18 }
  0xcc   : >> { %s419_s20 = sshll.u32 %s216_s12, 4 }
  0xcd   : >> { %s230_s24 = scalar_lea.hbm %s877_s1, %s419_s20  ;;  %s888_s29 = smov (!%p418_p6, %s227_s29), %s886_s18 }
  0xce   : >> { %s232_s30 = scalar_lea.sflag [#allocation2], %s888_s29  ;;  %s635_s19 = scalar_lea.hbm %s230_s24, 16 }
  0xcf   : >> { %p636_p7 = scmp.ne.s32.totalorder %s230_s24, %s635_s19  ;;  %p638_p8 = scmp.lt.s32.totalorder %s230_s24, %s877_s1 }
  0xd0   : >> { %p639_p9 = scmp.lt.s32.totalorder %s744_s7, %s635_s19 }
  0xd2   : >> { %p640_p10 = por %p639_p9, %p638_p8 }
  0xd4   : >> { %p641_p11 = pnand %p640_p10, %p636_p7 }
  0xd6   : >> { %644 = shalt.err (!%p641_p11)  }
  0xd7   : >> { %s645_s3 = scalar_lea.vmem %s241_s26, 16  ;;  %p650_p13 = scmp.lt.s32.totalorder %s241_s26, %s753_s13 }
  0xd8   : >> { %p646_p12 = scmp.ne.s32.totalorder %s241_s26, %s645_s3  ;;  %p651_p0 = scmp.lt.s32.totalorder %s756_s0, %s645_s3 }
  0xda   : >> { %p652_p1 = por %p651_p0, %p650_p13 }
  0xdc   : >> { %p653_p2 = pnand %p652_p1, %p646_p12 }
  0xde   : >> { %656 = shalt.err (!%p653_p2)  }
  0xdf   : >> { %243 = dma.hbm_to_vmem [thread:$0]  %s230_s24, 16, %s241_s26, %s232_s30 }
  0xe0   : >> { %s196_s27 = sadd.s32 1, %s691_s27  }
  0xe1   : >> { %p193_p3 = scmp.ge.s32.totalorder %s196_s27, 248  }
  0xe3   : > { %195 = sbr.rel (!%p193_p3) target bundleno = 186 (0xba), region = 115 }
  0xe8   : > { %669 = dma.done.wait [#allocation2], 16 }
  0xe9   : > { %670 = vsyncadd [#allocation2], 4294967280 }
  0xea   : > { %671 = dma.done.wait [#allocation2 + $0x1], 16 }
  0xeb   : > { %672 = vsyncadd [#allocation2 + $0x1], 4294967280 }
  0xec   : > { %673 = dma.done.wait [#allocation2 + $0x2], 16 }
  0xed   : > { %674 = vsyncadd [#allocation2 + $0x2], 4294967280 }
  0xee   : > { %675 = dma.done.wait [#allocation2 + $0x3], 16 }
  0xef   : > { %676 = vsyncadd [#allocation2 + $0x3], 4294967280 }
  0xf0   : > { %677 = dma.done.wait [#allocation2 + $0x4], 16 }
  0xf1   : > { %678 = vsyncadd [#allocation2 + $0x4], 4294967280 }
  0xf2   : > { %679 = dma.done.wait [#allocation2 + $0x5], 16 }
  0xf3   : > { %680 = vsyncadd [#allocation2 + $0x5], 4294967280 }
  0xf4   : > { %681 = dma.done.wait [#allocation2 + $0x6], 16 }
  0xf5   : > { %682 = vsyncadd [#allocation2 + $0x6], 4294967280 }
  0xf6   : > { %683 = dma.done.wait [#allocation2 + $0x7], 16 }
  0xf7   : > { %684 = vsyncadd [#allocation2 + $0x7], 4294967280 }
  0xf8 PF: > { %s18_s14 = sadd.s32 1, %s687_s14  }
  0xf9   : > { %p15_p4 = scmp.ge.s32.totalorder %s18_s14, 3  }
  0xfb   :  { %17 = sbr.rel (!%p15_p4) target bundleno = 16 (0x10), region = 126 }
 0x100   :  { %298 = vsyncmov [#allocation2] }
 0x103   :  { %s299_s15 = vpop.sfrf %298 }
 0x104   :  { %p422_p5 = scmp.ne.s32.totalorder %s299_s15, 0 }
 0x106   :  { %303 = shalt.err (%p422_p5)  }
 0x107   :  { %305 = vsyncmov [#allocation2 + $0x1] }
 0x10a   :  { %s306_s25 = vpop.sfrf %305 }
 0x10b   :  { %p423_p6 = scmp.ne.s32.totalorder %s306_s25, 0 }
 0x10d   :  { %310 = shalt.err (%p423_p6)  }
 0x10e   :  { %312 = vsyncmov [#allocation2 + $0x2] }
 0x111   :  { %s313_s7 = vpop.sfrf %312 }
 0x112   :  { %p424_p7 = scmp.ne.s32.totalorder %s313_s7, 0 }
 0x114   :  { %317 = shalt.err (%p424_p7)  }
 0x115   :  { %319 = vsyncmov [#allocation2 + $0x3] }
 0x118   :  { %s320_s13 = vpop.sfrf %319 }
 0x119   :  { %p425_p8 = scmp.ne.s32.totalorder %s320_s13, 0 }
 0x11b   :  { %324 = shalt.err (%p425_p8)  }
 0x11c   :  { %326 = vsyncmov [#allocation2 + $0x4] }
 0x11f   :  { %s327_s0 = vpop.sfrf %326 }
 0x120   :  { %p426_p9 = scmp.ne.s32.totalorder %s327_s0, 0 }
 0x122   :  { %331 = shalt.err (%p426_p9)  }
 0x123   :  { %333 = vsyncmov [#allocation2 + $0x5] }
 0x126   :  { %s334_s1 = vpop.sfrf %333 }
 0x127   :  { %p427_p10 = scmp.ne.s32.totalorder %s334_s1, 0 }
 0x129   :  { %338 = shalt.err (%p427_p10)  }
 0x12a   :  { %340 = vsyncmov [#allocation2 + $0x6] }
 0x12d   :  { %s341_s2 = vpop.sfrf %340 }
 0x12e   :  { %p428_p11 = scmp.ne.s32.totalorder %s341_s2, 0 }
 0x130   :  { %345 = shalt.err (%p428_p11)  }
 0x131   :  { %347 = vsyncmov [#allocation2 + $0x7] }
 0x134   :  { %s348_s14 = vpop.sfrf %347 }
 0x135   :  { %p429_p12 = scmp.ne.s32.totalorder %s348_s14, 0 }
 0x137   :  { %352 = shalt.err (%p429_p12)  }

</bundles_post_ra>
